<compile_context>
chip_gen: v7x
topology: tpu7x:2x2x1
jax: 0.10.0
libtpu: 0.0.40
codegen_flags: <defaults>
</compile_context>

<pallas_src>
import jax
import jax.numpy as jnp
from jax.experimental import pallas as pl
from jax.experimental.pallas import tpu as pltpu


def _round_up(x: int, m: int) -> int:
    return ((x + m - 1) // m) * m


def _device_traits():
    """Best-effort chip detection for tiling knobs; conservative fallback if unknown."""
    try:
        kind = jax.devices()[0].device_kind.lower()
    except Exception:
        kind = ""
    is_v7 = "v7" in kind
    is_v6 = "v6" in kind
    mxu_n = 256 if (is_v6 or is_v7) else 128      # v6e/v7x MXU 2x256x256; v5e 4x128x128
    # Tile-sizing VMEM budget: v7x has 64 MiB physical (keep headroom); v5e/v6e 128 MiB.
    vmem_budget = (48 << 20) if (is_v7 or kind == "") else (100 << 20)
    return mxu_n, vmem_budget, is_v7


def _choose_tm(M, K_pad, hidden, TN, out_itemsize, vmem_budget, at_least_two_blocks):
    """Largest M block that fits the VMEM budget (double-buffered x/out + h scratch)."""
    m16 = _round_up(max(M, 1), 16)            # bf16 packs 16 rows per packed vreg
    if m16 <= 128:
        return m16
    per_row = 2 * (K_pad * 2 + TN * out_itemsize) + hidden * 2
    resident = 2 * (K_pad * hidden * 2 + hidden * TN * 2 + TN * 4 + hidden * 4)
    avail = max(vmem_budget - resident, 2 << 20)
    tm_fit = max((avail // per_row) // 128 * 128, 128)
    tm = min(2048, tm_fit, _round_up(M, 128))
    # On v7x keep at least 2 M blocks so dimension_semantics=("parallel",) feeds both TCs.
    if at_least_two_blocks and _round_up(M, tm) == tm and _round_up(M, 128) >= 256:
        tm = max(128, min(tm, _round_up(_round_up(M, 128) // 2, 128)))
    return tm


# ---------------- kernels ----------------

def _hypernet_kernel_fullproj(x_ref, w1_ref, b1_ref, w2_ref, b2_ref, o_ref):
    # x_ref : (TM, K_pad)        bf16
    # w1_ref: (K_pad, hidden)    bf16 (resident across the grid)
    # b1_ref: (1, hidden)        f32
    # w2_ref: (hidden, proj_pad) bf16 (resident across the grid)
    # b2_ref: (1, proj_pad)      f32
    # o_ref : (TM, proj_pad)     lane-dense output block
    h = jnp.dot(x_ref[...], w1_ref[...], preferred_element_type=jnp.float32)
    h = jnp.maximum(h + b1_ref[...], 0.0).astype(w2_ref.dtype)
    y = jnp.dot(h, w2_ref[...], preferred_element_type=jnp.float32) + b2_ref[...]
    o_ref[...] = y.astype(o_ref.dtype)


def _hypernet_kernel_projtiled(x_ref, w1_ref, b1_ref, w2_ref, b2_ref, o_ref, h_ref):
    # Fallback for very large proj: grid = (M blocks, proj tiles), proj axis innermost
    # and "arbitrary"; layer-1 result cached in VMEM scratch and reused for every tile.
    @pl.when(pl.program_id(1) == 0)
    def _():
        h = jnp.dot(x_ref[...], w1_ref[...], preferred_element_type=jnp.float32)
        h_ref[...] = jnp.maximum(h + b1_ref[...], 0.0).astype(h_ref.dtype)

    y = jnp.dot(h_ref[...], w2_ref[...], preferred_element_type=jnp.float32) + b2_ref[...]
    o_ref[...] = y.astype(o_ref.dtype)


# ---------------- wrappers ----------------

def _jnp_forward(x2d, w1, b1, w2, b2, compute_dtype, out_dtype):
    """Plain-JAX path with identical numerics to the kernel (bf16 in, f32 accumulate)."""
    xc = x2d.astype(compute_dtype)
    h = jnp.dot(xc, w1.astype(compute_dtype), preferred_element_type=jnp.float32)
    h = jnp.maximum(h + b1.reshape(1, -1).astype(jnp.float32), 0.0).astype(compute_dtype)
    y = jnp.dot(h, w2.astype(compute_dtype), preferred_element_type=jnp.float32)
    y = y + b2.reshape(1, -1).astype(jnp.float32)
    return y.astype(out_dtype)


def task_hypernet_forward_batched(x, w1, b1, w2, b2, *, compute_dtype=jnp.bfloat16,
                                  out_dtype=jnp.float32, force_pallas=False,
                                  proj_tile=None):
    """Batched TaskHyperNet: x is (M, input_dim) -> (M, projected_dim).

    out_dtype: pass jnp.bfloat16 on v5e to halve the dominant f32 writeback stream.
    proj_tile: force the proj-tiled fallback path (testing / very large proj dims).
    """
    M, input_dim = x.shape
    hidden = w1.shape[1]
    proj_dim = w2.shape[1]

    # Tiny-M calls (incl. the single-task path) are pure launch/DMA overhead: skip Pallas.
    if M < 64 and not force_pallas:
        return _jnp_forward(x, w1, b1, w2, b2, compute_dtype, out_dtype)

    mxu_n, vmem_budget, is_v7 = _device_traits()
    out_itemsize = jnp.dtype(out_dtype).itemsize

    # --- padding: lane-dense K, MXU-width-multiple proj ---
    K_pad = _round_up(input_dim, 128)
    proj_pad = _round_up(proj_dim, mxu_n)

    # --- proj tiling: collapse to full width whenever w2 fits comfortably in VMEM ---
    w2_vmem_threshold = 16 << 20
    if proj_tile is not None:
        TN = max(128, _round_up(proj_tile, 128))
    elif hidden * proj_pad * 2 > w2_vmem_threshold:
        TN = _round_up(min(proj_pad, 1024), mxu_n)
    else:
        TN = proj_pad
    tiled = TN < proj_pad
    if tiled:
        proj_pad = _round_up(proj_pad, TN)

    # --- M tiling sized against the per-generation VMEM budget ---
    TM = _choose_tm(M, K_pad, hidden, TN, out_itemsize, vmem_budget, is_v7)
    M_pad = _round_up(M, TM)

    # --- operand prep (bf16 weights/acts, f32 biases, zero padding is exact) ---
    xb = x.astype(compute_dtype)
    if (M_pad != M) or (K_pad != input_dim):
        xb = jnp.pad(xb, ((0, M_pad - M), (0, K_pad - input_dim)))
    w1c = w1.astype(compute_dtype)
    if K_pad != input_dim:
        w1c = jnp.pad(w1c, ((0, K_pad - input_dim), (0, 0)))
    w2c = w2.astype(compute_dtype)
    if proj_pad != proj_dim:
        w2c = jnp.pad(w2c, ((0, 0), (0, proj_pad - proj_dim)))
    b1_2d = b1.reshape(1, hidden).astype(jnp.float32)
    b2_2d = b2.reshape(1, proj_dim).astype(jnp.float32)
    if proj_pad != proj_dim:
        b2_2d = jnp.pad(b2_2d, ((0, 0), (0, proj_pad - proj_dim)))

    num_m_blocks = M_pad // TM

    # --- exact VMEM requirement -> vmem_limit_bytes (capped by the per-chip budget) ---
    block_bytes = (TM * K_pad * 2 + K_pad * hidden * 2 + hidden * 4
                   + hidden * TN * 2 + TN * 4 + TM * TN * out_itemsize)
    needed = 2 * block_bytes + TM * hidden * 2          # double-buffering + h scratch
    vmem_limit = int(min(vmem_budget, max(2 * needed + (8 << 20), 16 << 20)))

    # --- advisory cost estimate (exact for 1-D grid; tiled refetches w2/b2 per M block) ---
    flops = 2 * M_pad * K_pad * hidden + 2 * M_pad * hidden * proj_pad
    w2_fetches = num_m_blocks if tiled else 1
    bytes_accessed = (M_pad * K_pad * 2 + K_pad * hidden * 2 + hidden * 4
                      + w2_fetches * (hidden * proj_pad * 2 + proj_pad * 4)
                      + M_pad * proj_pad * out_itemsize)
    cost = pl.CostEstimate(flops=flops, transcendentals=0, bytes_accessed=bytes_accessed)

    if not tiled:
        grid_spec = pltpu.PrefetchScalarGridSpec(
            num_scalar_prefetch=0,
            grid=(num_m_blocks,),
            in_specs=[
                pl.BlockSpec((TM, K_pad), lambda i: (i, 0)),        # x block
                pl.BlockSpec((K_pad, hidden), lambda i: (0, 0)),    # w1 (resident)
                pl.BlockSpec((1, hidden), lambda i: (0, 0)),        # b1 (resident)
                pl.BlockSpec((hidden, TN), lambda i: (0, 0)),       # w2 (resident, full proj)
                pl.BlockSpec((1, TN), lambda i: (0, 0)),            # b2 (resident)
            ],
            out_specs=pl.BlockSpec((TM, TN), lambda i: (i, 0)),
        )
        kernel = _hypernet_kernel_fullproj
        dims = ("parallel",)
    else:
        grid_spec = pltpu.PrefetchScalarGridSpec(
            num_scalar_prefetch=0,
            grid=(num_m_blocks, proj_pad // TN),
            in_specs=[
                pl.BlockSpec((TM, K_pad), lambda i, j: (i, 0)),
                pl.BlockSpec((K_pad, hidden), lambda i, j: (0, 0)),
                pl.BlockSpec((1, hidden), lambda i, j: (0, 0)),
                pl.BlockSpec((hidden, TN), lambda i, j: (0, j)),
                pl.BlockSpec((1, TN), lambda i, j: (0, j)),
            ],
            out_specs=pl.BlockSpec((TM, TN), lambda i, j: (i, j)),
            scratch_shapes=[pltpu.VMEM((TM, hidden), compute_dtype)],
        )
        kernel = _hypernet_kernel_projtiled
        dims = ("parallel", "arbitrary")   # j carries the cached h across proj tiles

    out = pl.pallas_call(
        kernel,
        out_shape=jax.ShapeDtypeStruct((M_pad, proj_pad), out_dtype),
        grid_spec=grid_spec,
        compiler_params=pltpu.CompilerParams(
            dimension_semantics=dims,
            vmem_limit_bytes=vmem_limit,
        ),
        cost_estimate=cost,
    )(xb, w1c, b1_2d, w2c, b2_2d)

    return out[:M, :proj_dim]


def task_hypernet_forward(task_embedding, w1, b1, w2, b2):
    """Single-task forward matching the PyTorch module: .view(-1) in, .view(-1) out.

    At this size the layer is pure overhead for a Pallas launch, so it takes the
    plain-jnp fast path; batch many tasks via task_hypernet_forward_batched instead.
    """
    input_dim = w1.shape[0]
    x2d = task_embedding.reshape(1, input_dim)
    out = task_hypernet_forward_batched(x2d, w1, b1, w2, b2)
    return out.reshape(-1)


def init_params(key, input_dim, task_hidden_dim, projected_task_embedding_dim,
                std=0.01, weight_dtype=jnp.bfloat16):
    """Mirror of init_linear_layer: normal(std=0.01) weights, zero biases.
    Weights stored (in, out) in bf16 (MXU-native, half the HBM traffic); biases f32."""
    k1, k2 = jax.random.split(key)
    w1 = (std * jax.random.normal(k1, (input_dim, task_hidden_dim), dtype=jnp.float32)
          ).astype(weight_dtype)
    b1 = jnp.zeros((task_hidden_dim,), dtype=jnp.float32)
    w2 = (std * jax.random.normal(
        k2, (task_hidden_dim, projected_task_embedding_dim), dtype=jnp.float32)
          ).astype(weight_dtype)
    b2 = jnp.zeros((projected_task_embedding_dim,), dtype=jnp.float32)
    return w1, b1, w2, b2


def _reference_forward(x2d, w1, b1, w2, b2):
    """Plain-JAX reference with the same bf16 rounding as the kernel (f32 accumulation)."""
    xf = x2d.astype(jnp.bfloat16).astype(jnp.float32)
    w1f = w1.astype(jnp.bfloat16).astype(jnp.float32)
    w2f = w2.astype(jnp.bfloat16).astype(jnp.float32)
    h = jnp.maximum(xf @ w1f + b1.astype(jnp.float32), 0.0)
    h = h.astype(jnp.bfloat16).astype(jnp.float32)
    return h @ w2f + b2.astype(jnp.float32)


if __name__ == "__main__":
    # Config consistent with the module: task_embedding (2, 32) flattens to input_dim=64,
    # task_hidden_dim=128, projected_task_embedding_dim=64.
    input_dim = 64
    task_hidden_dim = 128
    projected_dim = 64

    key = jax.random.PRNGKey(0)
    k_emb, k_b1, k_b2, k_b3, k_params, k_params2 = jax.random.split(key, 6)

    task_embedding = jax.random.normal(k_emb, (2, 32), dtype=jnp.float32)
    w1, b1, w2, b2 = init_params(k_params, input_dim, task_hidden_dim, projected_dim)

    # 1) single-task path (exact PyTorch-module semantics; tiny-M fast path).
    out = jax.block_until_ready(task_hypernet_forward(task_embedding, w1, b1, w2, b2))
    ref = _reference_forward(task_embedding.reshape(1, input_dim), w1, b1, w2, b2).reshape(-1)
    assert out.shape == (projected_dim,)
    assert jnp.allclose(out, ref, atol=1e-3, rtol=1e-2), float(jnp.max(jnp.abs(out - ref)))

    # 2) small batch forced through the Pallas kernel (verifies the kernel at tiny M).
    xb = jax.random.normal(k_b1, (5, input_dim), dtype=jnp.float32)
    out_b = jax.block_until_ready(
        task_hypernet_forward_batched(xb, w1, b1, w2, b2, force_pallas=True))
    ref_b = _reference_forward(xb, w1, b1, w2, b2)
    assert out_b.shape == (5, projected_dim)
    assert jnp.allclose(out_b, ref_b, atol=1e-3, rtol=1e-2), float(jnp.max(jnp.abs(out_b - ref_b)))

    # 3) moderate batch -> collapsed 1-D grid over M, full-proj lane-dense output block.
    xl = jax.random.normal(k_b2, (333, input_dim), dtype=jnp.float32)
    out_l = jax.block_until_ready(task_hypernet_forward_batched(xl, w1, b1, w2, b2))
    ref_l = _reference_forward(xl, w1, b1, w2, b2)
    assert out_l.shape == (333, projected_dim)
    assert jnp.allclose(out_l, ref_l, atol=1e-3, rtol=1e-2), float(jnp.max(jnp.abs(out_l - ref_l)))

    # 4) proj-tiled fallback (h cached in VMEM scratch, proj axis innermost/"arbitrary").
    proj_big = 300
    w1b, b1b, w2b, b2b = init_params(k_params2, input_dim, task_hidden_dim, proj_big)
    xt = jax.random.normal(k_b3, (200, input_dim), dtype=jnp.float32)
    out_t = jax.block_until_ready(
        task_hypernet_forward_batched(xt, w1b, b1b, w2b, b2b, proj_tile=128))
    ref_t = _reference_forward(xt, w1b, b1b, w2b, b2b)
    assert out_t.shape == (200, proj_big)
    assert jnp.allclose(out_t, ref_t, atol=1e-3, rtol=1e-2), float(jnp.max(jnp.abs(out_t - ref_t)))

    print("KERNEL_OK")
</pallas_src>

<mosaic_0001>
module attributes {stable_mosaic.version = 11 : i64} {
  func.func @_hypernet_kernel_fullproj(%arg0: i32, %arg1: memref<16x128xbf16, #tpu.memory_space<vmem>>, %arg2: memref<128x128xbf16, #tpu.memory_space<vmem>>, %arg3: memref<1x128xf32, #tpu.memory_space<vmem>>, %arg4: memref<128x128xbf16, #tpu.memory_space<vmem>>, %arg5: memref<1x128xf32, #tpu.memory_space<vmem>>, %arg6: memref<16x128xf32, #tpu.memory_space<vmem>>) attributes {dimension_semantics = [#tpu.dimension_semantics<parallel>], iteration_bounds = array<i64: 1>, scalar_prefetch = 0 : i64, scratch_operands = 0 : i64, tpu.core_type = #tpu.core_type<tc>, window_params = [{transform_indices = @transform_0, window_bounds = array<i64: 16, 128>}, {pipeline_mode = #tpu.pipeline_mode<synchronous>, transform_indices = @transform_1, window_bounds = array<i64: 128, 128>}, {pipeline_mode = #tpu.pipeline_mode<synchronous>, transform_indices = @transform_2, window_bounds = array<i64: 1, 128>}, {pipeline_mode = #tpu.pipeline_mode<synchronous>, transform_indices = @transform_3, window_bounds = array<i64: 128, 128>}, {pipeline_mode = #tpu.pipeline_mode<synchronous>, transform_indices = @transform_4, window_bounds = array<i64: 1, 128>}, {transform_indices = @transform_5, window_bounds = array<i64: 16, 128>}]} {
    %c0 = arith.constant 0 : index
    %c0_0 = arith.constant 0 : index
    %0 = vector.load %arg1[%c0, %c0_0] : memref<16x128xbf16, #tpu.memory_space<vmem>>, vector<16x128xbf16>
    %c0_1 = arith.constant 0 : index
    %c0_2 = arith.constant 0 : index
    %1 = vector.load %arg2[%c0_1, %c0_2] : memref<128x128xbf16, #tpu.memory_space<vmem>>, vector<128x128xbf16>
    %cst = arith.constant dense<0.000000e+00> : vector<16x128xf32>
    %2 = tpu.matmul %0, %1, %cst {dimension_numbers = #tpu.dot_dimension_numbers<[1], [0], [0], [1], [0, 0, 1, 1], [], []>} : vector<16x128xbf16>, vector<128x128xbf16>, vector<16x128xf32> -> vector<16x128xf32>
    %c0_3 = arith.constant 0 : index
    %c0_4 = arith.constant 0 : index
    %3 = vector.load %arg3[%c0_3, %c0_4] : memref<1x128xf32, #tpu.memory_space<vmem>>, vector<1x128xf32>
    %4 = vector.broadcast %3 : vector<1x128xf32> to vector<16x128xf32>
    %5 = arith.addf %2, %4 : vector<16x128xf32>
    %cst_5 = arith.constant 0.000000e+00 : f32
    %6 = vector.broadcast %cst_5 : f32 to vector<16x128xf32>
    %7 = arith.maximumf %5, %6 : vector<16x128xf32>
    %8 = arith.truncf %7 : vector<16x128xf32> to vector<16x128xbf16>
    %c0_6 = arith.constant 0 : index
    %c0_7 = arith.constant 0 : index
    %9 = vector.load %arg4[%c0_6, %c0_7] : memref<128x128xbf16, #tpu.memory_space<vmem>>, vector<128x128xbf16>
    %cst_8 = arith.constant dense<0.000000e+00> : vector<16x128xf32>
    %10 = tpu.matmul %8, %9, %cst_8 {dimension_numbers = #tpu.dot_dimension_numbers<[1], [0], [0], [1], [0, 0, 1, 1], [], []>} : vector<16x128xbf16>, vector<128x128xbf16>, vector<16x128xf32> -> vector<16x128xf32>
    %c0_9 = arith.constant 0 : index
    %c0_10 = arith.constant 0 : index
    %11 = vector.load %arg5[%c0_9, %c0_10] : memref<1x128xf32, #tpu.memory_space<vmem>>, vector<1x128xf32>
    %12 = vector.broadcast %11 : vector<1x128xf32> to vector<16x128xf32>
    %13 = arith.addf %10, %12 : vector<16x128xf32>
    %c0_11 = arith.constant 0 : index
    %c0_12 = arith.constant 0 : index
    %14 = vector.load %arg6[%c0_11, %c0_12] : memref<16x128xf32, #tpu.memory_space<vmem>>, vector<16x128xf32>
    tpu.vector_store %arg6[%c0_11, %c0_12], %13 {strides = array<i32>} : memref<16x128xf32, #tpu.memory_space<vmem>>, vector<16x128xf32>,
    return
  }
  func.func @transform_0(%arg0: i32) -> (i32, i32) {
    %c0_i32 = arith.constant 0 : i32
    %c0_i32_0 = arith.constant 0 : i32
    return %arg0, %c0_i32 : i32, i32
  }
  func.func @transform_1(%arg0: i32) -> (i32, i32) {
    %c0_i32 = arith.constant 0 : i32
    %c0_i32_0 = arith.constant 0 : i32
    %c0_i32_1 = arith.constant 0 : i32
    return %c0_i32, %c0_i32_0 : i32, i32
  }
  func.func @transform_2(%arg0: i32) -> (i32, i32) {
    %c0_i32 = arith.constant 0 : i32
    %c0_i32_0 = arith.constant 0 : i32
    %c0_i32_1 = arith.constant 0 : i32
    return %c0_i32, %c0_i32_0 : i32, i32
  }
  func.func @transform_3(%arg0: i32) -> (i32, i32) {
    %c0_i32 = arith.constant 0 : i32
    %c0_i32_0 = arith.constant 0 : i32
    %c0_i32_1 = arith.constant 0 : i32
    return %c0_i32, %c0_i32_0 : i32, i32
  }
  func.func @transform_4(%arg0: i32) -> (i32, i32) {
    %c0_i32 = arith.constant 0 : i32
    %c0_i32_0 = arith.constant 0 : i32
    %c0_i32_1 = arith.constant 0 : i32
    return %c0_i32, %c0_i32_0 : i32, i32
  }
  func.func @transform_5(%arg0: i32) -> (i32, i32) {
    %c0_i32 = arith.constant 0 : i32
    %c0_i32_0 = arith.constant 0 : i32
    return %arg0, %c0_i32 : i32, i32
  }
}

</mosaic_0001>

<bundles_post_ra>
// kernel: tpu_custom_call.1
= control target key start
LH: loop header
LB: loop body
LE: loop exit
PB: predicated region body
PF: predicated region fallthrough
CT: control target
= control target key end

     0   :  { %10 = vsyncpa [#allocation3], 0  ;;  %s626_s0 = inlined_call_operand.hbm [shape: bf16[16,128], index: 0, kind: input, shape index: {}]   ;;  %s627_s1 = inlined_call_operand.hbm [shape: bf16[128,128], index: 1, kind: input, shape index: {}]   ;;  %s628_s2 = inlined_call_operand.vmem [shape: f32[1,128], index: 2, kind: input, shape index: {}]   ;;  %s629_s3 = inlined_call_operand.hbm [shape: bf16[128,128], index: 3, kind: input, shape index: {}]   ;;  %s630_s4 = inlined_call_operand.vmem [shape: f32[1,128], index: 4, kind: input, shape index: {}]   ;;  %s631_s5 = inlined_call_operand.hbm [shape: f32[16,128], index: 5, kind: output, shape index: {}]  }
   0x1   :  { %11 = vsyncpa [#allocation6], 0 }
   0x2   :  { %12 = vsyncpa [#allocation4], 0  ;;  %s516_s18 = smov [#allocation5]   ;;  %s517_s20 = smov [#allocation2]  }
   0x3   :  { %s30_s19 = sshll.u32 %s516_s18, 4  ;;  %s18_s21 = sshll.u32 %s517_s20, 4  ;;  %s31_s19 = int_to_ptr.vmem [resolvable:$true] %s30_s19  ;;  %s556_s21 = int_to_ptr.vmem [resolvable:$true] %s18_s21 }
   0x4   :  { %s422_s24 = scalar_lea.hbm %s627_s1, 1024 }
   0x5   :  { %p423_p0 = scmp.ne.s32.totalorder %s627_s1, %s422_s24  ;;  %p426_p1 = scmp.lt.u32.totalorder %s422_s24, %s627_s1 }
   0x7   :  { %p428_p2 = pnand %p426_p1, %p423_p0 }
   0x9   :  { %431 = shalt.err (!%p428_p2)
}
   0xa   :  { %s432_s29 = scalar_lea.vmem %s31_s19, 1024  ;;  %p437_p4 = scmp.lt.s32.totalorder %s31_s19, %s31_s19 }
   0xb   :  { %p433_p3 = scmp.ne.s32.totalorder %s31_s19, %s432_s29  ;;  %p438_p5 = scmp.lt.s32.totalorder %s432_s29, %s432_s29 }
   0xd   :  { %p439_p6 = por %p438_p5, %p437_p4 }
   0xf   :  { %p440_p7 = pnand %p439_p6, %p433_p3 }
  0x11   :  { %443 = shalt.err (!%p440_p7)
}
  0x12   :  { %s518_s30 = smov 64   ;;  %s519_s6 = smov 4  }
  0x13   :  { %36 = dma.hbm_to_vmem [thread:$0]  %s627_s1, 1024, %s31_s19, [#allocation6], %s518_s30, %s518_s30, %s519_s6  }
  0x14   :  { %s444_s11 = scalar_lea.hbm %s626_s0, 128 }
  0x15   :  { %p445_p8 = scmp.ne.s32.totalorder %s626_s0, %s444_s11  ;;  %p448_p9 = scmp.lt.u32.totalorder %s444_s11, %s626_s0 }
  0x17   :  { %p450_p10 = pnand %p448_p9, %p445_p8 }
  0x19   :  { %453 = shalt.err (!%p450_p10)
}
  0x1a   :  { %s454_s16 = scalar_lea.vmem %s556_s21, 128  ;;  %p459_p12 = scmp.lt.s32.totalorder %s556_s21, %s556_s21 }
  0x1b   :  { %p455_p11 = scmp.ne.s32.totalorder %s556_s21, %s454_s16  ;;  %p460_p13 = scmp.lt.s32.totalorder %s454_s16, %s454_s16 }
  0x1d   :  { %p461_p0 = por %p460_p13, %p459_p12 }
  0x1f   :  { %p462_p1 = pnand %p461_p0, %p455_p11 }
  0x21   :  { %465 = shalt.err (!%p462_p1)
}
  0x22   :  { %24 = dma.hbm_to_vmem [thread:$0]  %s626_s0, 128, %s556_s21, [#allocation3], %s518_s30, %s518_s30, %s519_s6  }
  0x23   :  { %s520_s18 = smov [#allocation7]   ;;  %s466_s23 = scalar_lea.hbm %s629_s3, 1024 }
  0x24   :  { %s44_s19 = sshll.u32 %s520_s18, 4  ;;  %p467_p2 = scmp.ne.s32.totalorder %s629_s3, %s466_s23  ;;  %s45_s19 = int_to_ptr.vmem [resolvable:$true] %s44_s19 }
  0x25   :  { %p470_p3 = scmp.lt.u32.totalorder %s466_s23, %s629_s3 }
  0x27   :  { %p472_p4 = pnand %p470_p3, %p467_p2 }
  0x29   :  { %475 = shalt.err (!%p472_p4)
}
  0x2a   :  { %s476_s28 = scalar_lea.vmem %s45_s19, 1024  ;;  %p481_p6 = scmp.lt.s32.totalorder %s45_s19, %s45_s19 }
  0x2b   :  { %p477_p5 = scmp.ne.s32.totalorder %s45_s19, %s476_s28  ;;  %p482_p7 = scmp.lt.s32.totalorder %s476_s28, %s476_s28 }
  0x2d   :  { %p483_p8 = por %p482_p7, %p481_p6 }
  0x2f   :  { %p484_p9 = pnand %p483_p8, %p477_p5 }
  0x31   :  { %487 = shalt.err (!%p484_p9)
}
  0x32   :  { %50 = dma.hbm_to_vmem [thread:$0]  %s629_s3, 1024, %s45_s19, [#allocation6], %s518_s30, %s518_s30, %s519_s6  }
  0x33   :  { %510 = dma.done.wait [#allocation3], 128  }
  0x34   :  { %511 = vsyncadd [#allocation3], 4294967168 }
  0x35   :  { %512 = dma.done.wait [#allocation6], 2048  }
  0x36   :  { %513 = vsyncadd [#allocation6], 4294965248  ;;  %v521_v0 = vmov 0.0   ;;  %vm522_vm0 = vmmov 0   ;;  %v405_v1 = vld [vmem:[#allocation5] sm:$0xff]   ;;  %v406_v2 = vld [vmem:[#allocation5 + $0x8] sm:$0xff]  }
  0x37   :  { %355 = vmatprep.subr.bf16.mxu0 %v521_v0  ;;  %371 = vmatprep.mubr.msk.bf16.mxu0 %vm522_vm0, %v521_v0  ;;  %v407_v3 = vld [vmem:[#allocation5 + $0x10] sm:$0xff]   ;;  %v414_v4 = vld [vmem:[#allocation7] sm:$0xff]   ;;  %v408_v5 = vld [vmem:[#allocation5 + $0x18] sm:$0xff]   ;;  %s523_s7 = smov [#allocation8]  }
  0x38   :  { %375 = vmatprep.subr.bf16.mxu1 %v521_v0  ;;  %391 = vmatprep.mubr.msk.bf16.mxu1 %vm522_vm0, %v521_v0  ;;  %v415_v6 = vld [vmem:[#allocation7 + $0x8] sm:$0xff]   ;;  %v409_v7 = vld [vmem:[#allocation5 + $0x20] sm:$0xff]   ;;  %v416_v8 = vld [vmem:[#allocation7 + $0x10] sm:$0xff]   ;;  %s305_s8 = sshll.u32 %s523_s7, 4  ;;  %s306_s8 = int_to_ptr.vmem [resolvable:$true] %s305_s8 }
  0x39   :  { %356 = vmatpush3.bf16.msra.mxu0 %v405_v1  ;;  %376 = vmatpush3.bf16.msra.mxu1 %v414_v4  ;;  %v410_v9 = vld [vmem:[#allocation5 + $0x28] sm:$0xff]   ;;  %v417_v10 = vld [vmem:[#allocation7 + $0x18] sm:$0xff]   ;;  %v411_v11 = vld [vmem:[#allocation5 + $0x30] sm:$0xff]   ;;  %p493_p11 = scmp.lt.s32.totalorder %s306_s8, %s306_s8 }
  0x3a   :  { %357 = vmatprep.subr.bf16.mxu0 %v521_v0  ;;  %377 = vmatprep.subr.bf16.mxu1 %v521_v0  ;;  %v418_v12 = vld [vmem:[#allocation7 + $0x20] sm:$0xff]   ;;  %v412_v13 = vld [vmem:[#allocation5 + $0x38] sm:$0xff]   ;;  %v419_v14 = vld [vmem:[#allocation7 + $0x28] sm:$0xff]  }
  0x3b   :  { %v413_v15 = vld [vmem:[#allocation2] sm:$0xff]   ;;  %v420_v16 = vld [vmem:[#allocation7 + $0x30] sm:$0xff]  }
  0x3c   :  { %v421_v17 = vld [vmem:[#allocation7 + $0x38] sm:$0xff]  }
  0x3d   :  { %358 = vmatpush3.bf16.msra.mxu0 %v406_v2  ;;  %378 = vmatpush3.bf16.msra.mxu1 %v415_v6  ;;  %v318_v18 = vld [vmem:[%s628_s2] ss:$0 sm:$0xff]  ;;  %s488_s2 = scalar_lea.vmem %s306_s8, 256 }
  0x3e   :  { %359 = vmatprep.subr.bf16.mxu0 %v521_v0  ;;  %379 = vmatprep.subr.bf16.mxu1 %v521_v0  ;;  %v328_v28 = vld [vmem:[%s630_s4] ss:$0 sm:$0xff]  ;;  %p489_p10 = scmp.ne.s32.totalorder %s306_s8, %s488_s2  ;;  %p494_p12 = scmp.lt.s32.totalorder %s488_s2, %s488_s2 }
  0x40   :  { %p495_p13 = por %p494_p12, %p493_p11 }
  0x41   :  { %360 = vmatpush3.bf16.msra.mxu0 %v407_v3  ;;  %380 = vmatpush3.bf16.msra.mxu1 %v416_v8 }
  0x42   :  { %361 = vmatprep.subr.bf16.mxu0 %v521_v0  ;;  %381 = vmatprep.subr.bf16.mxu1 %v521_v0  ;;  %p496_p0 = pnand %p495_p13, %p489_p10 }
  0x45   :  { %362 = vmatpush3.bf16.msra.mxu0 %v408_v5  ;;  %382 = vmatpush3.bf16.msra.mxu1 %v417_v10 }
  0x46   :  { %363 = vmatprep.subr.bf16.mxu0 %v521_v0  ;;  %383 = vmatprep.subr.bf16.mxu1 %v521_v0 }
  0x49   :  { %364 = vmatpush3.bf16.msra.mxu0 %v409_v7  ;;  %384 = vmatpush3.bf16.msra.mxu1 %v418_v12 }
  0x4a   :  { %365 = vmatprep.subr.bf16.mxu0 %v521_v0  ;;  %385 = vmatprep.subr.bf16.mxu1 %v521_v0 }
  0x4d   :  { %366 = vmatpush3.bf16.msra.mxu0 %v410_v9  ;;  %386 = vmatpush3.bf16.msra.mxu1 %v419_v14 }
  0x4e   :  { %367 = vmatprep.subr.bf16.mxu0 %v521_v0  ;;  %387 = vmatprep.subr.bf16.mxu1 %v521_v0 }
  0x51   :  { %368 = vmatpush3.bf16.msra.mxu0 %v411_v11  ;;  %388 = vmatpush3.bf16.msra.mxu1 %v420_v16 }
  0x52   :  { %369 = vmatprep.subr.bf16.mxu0 %v521_v0  ;;  %389 = vmatprep.subr.bf16.mxu1 %v521_v0 }
  0x55   :  { %370 = vmatpush3.bf16.msra.mxu0 %v412_v13  ;;  %390 = vmatpush3.bf16.msra.mxu1 %v421_v17 }
  0x58   :  { %372 = vmatmul.mubr.bf16.vlgmr.msra.gmra.mrb[0].mxu0 %v413_v15 }
 0x12b   :  { %v176_v19 = vpop.f32.mrb[0].mxu0 }
 0x12c   :  { %v177_v20 = vadd.f32 %v318_v18, %v176_v19  ;;  %v373_v21 = vpop.f32.mrb[1].mxu0 }
 0x12d   :  { %v179_v22 = vpop.f32.mrb[2].mxu0 }
 0x12e   :  { %v180_v23 = vadd.f32 %v318_v18, %v179_v22  ;;  %v374_v24 = vpop.f32.mrb[3].mxu0  ;;  %v183_v25 = vmax.f32 %v177_v20, 0.0 }
 0x130   :  { %v184_v26 = vmax.f32 %v180_v23, 0.0 }
 0x132   :  { %v185_v27 = vpack.c.bf16 %v184_v26, %v183_v25 }
 0x134   :  { %392 = vmatmul.mubr.bf16.vlgmr.msra.gmra.mrb[0].mxu1 %v185_v27 }
 0x207   :  { %v291_v29 = vpop.f32.mrb[0].mxu1 }
 0x208   :  { %v292_v30 = vadd.f32 %v328_v28, %v291_v29  ;;  %v393_v31 = vpop.f32.mrb[1].mxu1 }
 0x209   :  { %v294_v32 = vpop.f32.mrb[2].mxu1 }
 0x20a   :  { %298 = vst [vmem:[#allocation8] sm:$0xff] %v292_v30  ;;  %v295_v33 = vadd.f32 %v328_v28, %v294_v32  ;;  %v394_v34 = vpop.f32.mrb[3].mxu1 }
 0x20c   :  { %299 = vst [vmem:[#allocation8 + $0x8] sm:$0xff] %v295_v33 }
 0x20d   :  { %499 = shalt.err (!%p496_p0)
}
 0x20e   :  { %s500_s10 = scalar_lea.hbm %s631_s5, 256 }
 0x20f   :  { %p501_p1 = scmp.ne.s32.totalorder %s631_s5, %s500_s10  ;;  %p504_p2 = scmp.lt.u32.totalorder %s500_s10, %s631_s5 }
 0x211   :  { %p506_p3 = pnand %p504_p2, %p501_p1 }
 0x213   :  { %509 = shalt.err (!%p506_p3)
}
 0x214   :  { %s524_s15 = smov 128   ;;  %s525_s16 = smov 8  }
 0x215   :  { %311 = dma.vmem_to_hbm [thread:$0]  %s306_s8, 256, %s631_s5, [#allocation4], %s524_s15, %s524_s15, %s525_s16  }
 0x216   :  { %514 = dma.done.wait [#allocation4], 256  }
 0x217   :  { %515 = vsyncadd [#allocation4], 4294967040 }
 0x218   :  { %315 = vsyncpa [#allocation3], 1 }
 0x219   :  { %316 = vsyncpa [#allocation6], 1 }
 0x21a   :  { %317 = vsyncpa [#allocation4], 1 }

</bundles_post_ra>
